<compile_context>
chip_gen: v7x
topology: tpu7x:2x2x1
jax: 0.10.0
libtpu: 0.0.40
codegen_flags: <defaults>
</compile_context>

<pallas_src>
import jax
import jax.numpy as jnp
from jax.experimental import pallas as pl
from jax.experimental.pallas import tpu as pltpu


def _chunk2_kernel(x_ref, o0_ref, o1_ref):
    # x_ref block is (2, tm, lane): index 0 = first half, 1 = second half.
    o0_ref[...] = x_ref[0]
    o1_ref[...] = x_ref[1]


def _lane_dense_layout(n_half, last_dim, dtype_bytes):
    """Factor one half into (rows, lane) with lane a multiple of 128 if possible."""
    lane = None
    for cand in (2048, 1024, 512, 256, 128):
        if n_half % cand == 0:
            lane = cand
            break
    if lane is None:
        # Fallback: keep the original trailing dim as the (full-extent) lane dim.
        lane = last_dim
    rows = n_half // lane
    # Target ~1 MiB per half per grid step (2 MiB input block + 2x1 MiB output
    # blocks, double-buffered = 8 MiB < every chip's default scoped VMEM).
    target = (1 << 20) // max(1, lane * dtype_bytes)
    tm = min(rows, max(8, target))
    if tm < rows:
        tm = max(8, (tm // 8) * 8)  # multiple of 8 when not the full extent
    return rows, lane, tm


def chunk2_dim0(x):
    """Pallas equivalent of torch.chunk(x, 2, dim=0) -> (first_half, second_half)."""
    assert x.shape[0] % 2 == 0, "Bi2Braid expects an even leading (bi-form) dim"
    half_shape = (x.shape[0] // 2,) + tuple(x.shape[1:])
    n_half = 1
    for d in half_shape:
        n_half *= d
    dtype_bytes = jnp.dtype(x.dtype).itemsize
    last_dim = x.shape[-1] if x.ndim > 1 else n_half
    rows, lane, tm = _lane_dense_layout(n_half, last_dim, dtype_bytes)

    x3 = x.reshape(2, rows, lane)
    grid = (pl.cdiv(rows, tm),)

    out0, out1 = pl.pallas_call(
        _chunk2_kernel,
        out_shape=(
            jax.ShapeDtypeStruct((rows, lane), x.dtype),
            jax.ShapeDtypeStruct((rows, lane), x.dtype),
        ),
        grid=grid,
        in_specs=[
            # Single input stream: leading dim 2 is full-extent, rows are tiled.
            pl.BlockSpec((2, tm, lane), lambda i: (0, i, 0)),
        ],
        out_specs=(
            pl.BlockSpec((tm, lane), lambda i: (i, 0)),
            pl.BlockSpec((tm, lane), lambda i: (i, 0)),
        ),
        compiler_params=pltpu.CompilerParams(
            dimension_semantics=("parallel",),  # shard row tiles across v7x's 2 TCs
        ),
        cost_estimate=pl.CostEstimate(
            flops=0,
            transcendentals=0,
            bytes_accessed=2 * x.size * dtype_bytes,  # read all + write all
        ),
    )(x3)
    return out0.reshape(half_shape), out1.reshape(half_shape)


def bi2braid(x_from_bi):
    """Forward pass of Bi2Braid: bi-form -> braid-form (pair of halves)."""
    if isinstance(x_from_bi, (list, tuple)):
        return [chunk2_dim0(t) for t in x_from_bi]
    return chunk2_dim0(x_from_bi)


if __name__ == "__main__":
    key = jax.random.PRNGKey(0)
    k1, k2 = jax.random.split(key)
    # Bi-form feature maps: batch=4 (two stacked halves), channels=4, 16x16 spatial
    x_maps = jax.random.normal(k1, (4, 4, 16, 16), dtype=jnp.float32)
    # Bi-form feature vectors: batch=4, hidden=32  (exercises the lane fallback)
    x_vecs = jax.random.normal(k2, (4, 32), dtype=jnp.float32)

    # Single-tensor input
    a, b = bi2braid(x_maps)
    jax.block_until_ready((a, b))
    ra, rb = jnp.split(x_maps, 2, axis=0)
    assert a.shape == ra.shape and b.shape == rb.shape
    assert jnp.array_equal(a, ra) and jnp.array_equal(b, rb), "tensor path mismatch"

    # List input (module also accepts list/tuple of bi-form tensors)
    outs = bi2braid([x_maps, x_vecs])
    jax.block_until_ready(outs)
    for (o0, o1), ref in zip(outs, (x_maps, x_vecs)):
        r0, r1 = jnp.split(ref, 2, axis=0)
        assert jnp.array_equal(o0, r0) and jnp.array_equal(o1, r1), "list path mismatch"

    print("KERNEL_OK")
</pallas_src>

<mosaic_0001>
module attributes {stable_mosaic.version = 11 : i64} {
  func.func @_chunk2_kernel(%arg0: i32, %arg1: memref<2x1x2048xf32, #tpu.memory_space<vmem>>, %arg2: memref<1x2048xf32, #tpu.memory_space<vmem>>, %arg3: memref<1x2048xf32, #tpu.memory_space<vmem>>) attributes {dimension_semantics = [#tpu.dimension_semantics<parallel>], iteration_bounds = array<i64: 1>, scalar_prefetch = 0 : i64, scratch_operands = 0 : i64, tpu.core_type = #tpu.core_type<tc>, window_params = [{transform_indices = @transform_0, window_bounds = array<i64: 2, 1, 2048>}, {transform_indices = @transform_1, window_bounds = array<i64: 1, 2048>}, {transform_indices = @transform_2, window_bounds = array<i64: 1, 2048>}]} {
    %c0 = arith.constant 0 : index
    %c0_0 = arith.constant 0 : index
    %c0_1 = arith.constant 0 : index
    %0 = vector.load %arg1[%c0, %c0_0, %c0_1] : memref<2x1x2048xf32, #tpu.memory_space<vmem>>, vector<1x1x2048xf32>
    %1 = vector.shape_cast %0 : vector<1x1x2048xf32> to vector<1x2048xf32>
    %c0_2 = arith.constant 0 : index
    %c0_3 = arith.constant 0 : index
    %2 = vector.load %arg2[%c0_2, %c0_3] : memref<1x2048xf32, #tpu.memory_space<vmem>>, vector<1x2048xf32>
    tpu.vector_store %arg2[%c0_2, %c0_3], %1 {strides = array<i32>} : memref<1x2048xf32, #tpu.memory_space<vmem>>, vector<1x2048xf32>,
    %c1 = arith.constant 1 : index
    %c0_4 = arith.constant 0 : index
    %c0_5 = arith.constant 0 : index
    %3 = vector.load %arg1[%c1, %c0_4, %c0_5] : memref<2x1x2048xf32, #tpu.memory_space<vmem>>, vector<1x1x2048xf32>
    %4 = vector.shape_cast %3 : vector<1x1x2048xf32> to vector<1x2048xf32>
    %c0_6 = arith.constant 0 : index
    %c0_7 = arith.constant 0 : index
    %5 = vector.load %arg3[%c0_6, %c0_7] : memref<1x2048xf32, #tpu.memory_space<vmem>>, vector<1x2048xf32>
    tpu.vector_store %arg3[%c0_6, %c0_7], %4 {strides = array<i32>} : memref<1x2048xf32, #tpu.memory_space<vmem>>, vector<1x2048xf32>,
    return
  }
  func.func @transform_0(%arg0: i32) -> (i32, i32, i32) {
    %c0_i32 = arith.constant 0 : i32
    %c0_i32_0 = arith.constant 0 : i32
    %c0_i32_1 = arith.constant 0 : i32
    return %c0_i32, %arg0, %c0_i32_0 : i32, i32, i32
  }
  func.func @transform_1(%arg0: i32) -> (i32, i32) {
    %c0_i32 = arith.constant 0 : i32
    %c0_i32_0 = arith.constant 0 : i32
    return %arg0, %c0_i32 : i32, i32
  }
  func.func @transform_2(%arg0: i32) -> (i32, i32) {
    %c0_i32 = arith.constant 0 : i32
    %c0_i32_0 = arith.constant 0 : i32
    return %arg0, %c0_i32 : i32, i32
  }
}

</mosaic_0001>

<bundles_post_ra>
// kernel: tpu_custom_call.1
= control target key start
LH: loop header
LB: loop body
LE: loop exit
PB: predicated region body
PF: predicated region fallthrough
CT: control target
= control target key end

     0   :  { %8 = vsyncpa [#allocation3], 0  ;;  %s204_s0 = inlined_call_operand.hbm [shape: f32[2,1,2048], index: 0, kind: input, shape index: {}]   ;;  %s205_s1 = inlined_call_operand.hbm [shape: f32[1,2048], index: 1, kind: output, shape index: {0}]   ;;  %s206_s2 = inlined_call_operand.hbm [shape: f32[1,2048], index: 2, kind: output, shape index: {1}]  }
   0x1   :  { %9 = vsyncpa [#allocation4], 0 }
   0x2   :  { %10 = vsyncpa [#allocation7], 0  ;;  %s141_s9 = smov [#allocation2]   ;;  %s69_s13 = scalar_lea.hbm %s204_s0, 512 }
   0x3   :  { %s16_s10 = sshll.u32 %s141_s9, 4  ;;  %p70_p0 = scmp.ne.s32.totalorder %s204_s0, %s69_s13  ;;  %s17_s10 = int_to_ptr.vmem [resolvable:$true] %s16_s10 }
   0x4   :  { %p73_p1 = scmp.lt.u32.totalorder %s69_s13, %s204_s0 }
   0x6   :  { %p75_p2 = pnand %p73_p1, %p70_p0 }
   0x8   :  { %78 = shalt.err (!%p75_p2)
}
   0x9   :  { %s79_s18 = scalar_lea.vmem %s17_s10, 512  ;;  %p84_p4 = scmp.lt.s32.totalorder %s17_s10, %s17_s10 }
   0xa   :  { %p80_p3 = scmp.ne.s32.totalorder %s17_s10, %s79_s18  ;;  %p85_p5 = scmp.lt.s32.totalorder %s79_s18, %s79_s18 }
   0xc   :  { %p86_p6 = por %p85_p5, %p84_p4 }
   0xe   :  { %p87_p7 = pnand %p86_p6, %p80_p3 }
  0x10   :  { %90 = shalt.err (!%p87_p7)
}
  0x11   :  { %s142_s19 = smov 256   ;;  %s143_s20 = smov 16  }
  0x12   :  { %22 = dma.hbm_to_vmem [thread:$0]  %s204_s0, 512, %s17_s10, [#allocation3], %s142_s19, %s142_s19, %s143_s20  }
  0x13   :  { %135 = dma.done.wait [#allocation3], 512  }
  0x14   :  { %136 = vsyncadd [#allocation3], 4294966784  ;;  %s144_s23 = smov [#allocation5]   ;;  %s145_s25 = smov [#allocation6]   ;;  %v26_v0 = vld [vmem:[#allocation2] sm:$0xff]  ;;  %v27_v1 = vld [vmem:[#allocation2 + $0x8] sm:$0xff] }
  0x15   :  { %s41_s24 = sshll.u32 %s144_s23, 4  ;;  %s51_s26 = sshll.u32 %s145_s25, 4  ;;  %v31_v2 = vld [vmem:[#allocation2 + $0x10] sm:$0xff]  ;;  %28 = vst [vmem:[#allocation5] sm:$0xff] %v26_v0  ;;  %29 = vst [vmem:[#allocation5 + $0x8] sm:$0xff] %v27_v1  ;;  %v32_v3 = vld [vmem:[#allocation2 + $0x18] sm:$0xff]  ;;  %s42_s24 = int_to_ptr.vmem [resolvable:$true] %s41_s24  ;;  %s173_s26 = int_to_ptr.vmem [resolvable:$true] %s51_s26 }
  0x16   :  { %33 = vst [vmem:[#allocation6] sm:$0xff] %v31_v2  ;;  %34 = vst [vmem:[#allocation6 + $0x8] sm:$0xff] %v32_v3  ;;  %s91_s27 = scalar_lea.vmem %s42_s24, 256  ;;  %p96_p9 = scmp.lt.s32.totalorder %s42_s24, %s42_s24 }
  0x17   :  { %p92_p8 = scmp.ne.s32.totalorder %s42_s24, %s91_s27  ;;  %p97_p10 = scmp.lt.s32.totalorder %s91_s27, %s91_s27 }
  0x19   :  { %p98_p11 = por %p97_p10, %p96_p9 }
  0x1b   :  { %p99_p12 = pnand %p98_p11, %p92_p8 }
  0x1d   :  { %102 = shalt.err (!%p99_p12)
}
  0x1e   :  { %s103_s29 = scalar_lea.hbm %s205_s1, 256 }
  0x1f   :  { %p104_p13 = scmp.ne.s32.totalorder %s205_s1, %s103_s29  ;;  %p107_p0 = scmp.lt.u32.totalorder %s103_s29, %s205_s1 }
  0x21   :  { %p109_p1 = pnand %p107_p0, %p104_p13 }
  0x23   :  { %112 = shalt.err (!%p109_p1)
}
  0x24   :  { %44 = dma.vmem_to_hbm [thread:$0]  %s42_s24, 256, %s205_s1, [#allocation4]  }
  0x25   :  { %s113_s8 = scalar_lea.vmem %s173_s26, 256  ;;  %p118_p3 = scmp.lt.s32.totalorder %s173_s26, %s173_s26 }
  0x26   :  { %p114_p2 = scmp.ne.s32.totalorder %s173_s26, %s113_s8  ;;  %p119_p4 = scmp.lt.s32.totalorder %s113_s8, %s113_s8 }
  0x28   :  { %p120_p5 = por %p119_p4, %p118_p3 }
  0x2a   :  { %p121_p6 = pnand %p120_p5, %p114_p2 }
  0x2c   :  { %124 = shalt.err (!%p121_p6)
}
  0x2d   :  { %s125_s11 = scalar_lea.hbm %s206_s2, 256 }
  0x2e   :  { %p126_p7 = scmp.ne.s32.totalorder %s206_s2, %s125_s11  ;;  %p129_p8 = scmp.lt.u32.totalorder %s125_s11, %s206_s2 }
  0x30   :  { %p131_p9 = pnand %p129_p8, %p126_p7 }
  0x32   :  { %134 = shalt.err (!%p131_p9)
}
  0x33   :  { %54 = dma.vmem_to_hbm [thread:$0]  %s173_s26, 256, %s206_s2, [#allocation7]  }
  0x34   :  { %137 = dma.done.wait [#allocation4], 256  }
  0x35   :  { %138 = vsyncadd [#allocation4], 4294967040 }
  0x36   :  { %139 = dma.done.wait [#allocation7], 256  }
  0x37   :  { %140 = vsyncadd [#allocation7], 4294967040 }
  0x38   :  { %61 = vsyncpa [#allocation3], 1 }
  0x39   :  { %62 = vsyncpa [#allocation4], 1 }
  0x3a   :  { %63 = vsyncpa [#allocation7], 1 }

</bundles_post_ra>
